<compile_context>
chip_gen: v7x
topology: tpu7x:2x2x1
jax: 0.10.0
libtpu: 0.0.40
codegen_flags: <defaults>
</compile_context>

<pallas_src>
import functools

import jax
import jax.numpy as jnp
from jax import lax
from jax.experimental import pallas as pl
from jax.experimental.pallas import tpu as pltpu

_LANES = 128


def _round_up(x, m):
    return (x + m - 1) // m * m


def _tpu_generation():
    try:
        kind = jax.devices()[0].device_kind.lower()
    except Exception:
        return 0
    for g in (7, 6, 5, 4):
        if "v%d" % g in kind:
            return g
    return 0


def _focal_pow(x, gamma):
    """x**gamma; small integer gamma stays on the VPU (no exp/log pair)."""
    g = float(gamma)
    if g == round(g) and 0.0 <= g <= 8.0:
        n = int(round(g))
        if n == 0:
            return jnp.ones_like(x)
        r = x
        for _ in range(n - 1):
            r = r * x
        return r
    return jnp.power(x, g)


def _stable_two_class_probs(x0, x1):
    """softmax over 2 channels, stable for arbitrarily large logit gaps."""
    d = x1 - x0
    e = jnp.exp(-jnp.abs(d))          # in (0, 1]: never overflows
    inv = 1.0 / (1.0 + e)
    big = inv                          # sigmoid(+|d|)
    small = e * inv                    # sigmoid(-|d|)  (no 1-x cancellation)
    pos = d >= 0
    p1 = jnp.where(pos, big, small)
    p0 = jnp.where(pos, small, big)
    return p0, p1


def _focal_elementwise(x_ref, t_ref, alpha, gamma):
    x0 = x_ref[0].astype(jnp.float32)
    x1 = x_ref[1].astype(jnp.float32)
    t = t_ref[...].astype(jnp.float32)
    p0, p1 = _stable_two_class_probs(x0, x1)
    pt = p0 * (1.0 - t) + p1 * t
    ce = -jnp.log(pt)
    # alpha_t = alpha*(1-t) + alpha*t == alpha (matches the reference module
    # exactly; differs from the alpha/(1-alpha) focal-loss convention).
    return alpha * _focal_pow(1.0 - pt, gamma) * ce


def _focal_sum_kernel(x_ref, t_ref, psum_ref, *, alpha, gamma, hw_valid,
                      needs_mask):
    i = pl.program_id(1)

    @pl.when(i == 0)
    def _():
        psum_ref[...] = jnp.zeros_like(psum_ref)

    loss = _focal_elementwise(x_ref, t_ref, alpha, gamma)   # (th, 128) f32
    th, lanes = loss.shape

    def _accum(l):
        if th % 8 == 0:
            part = l.reshape(th // 8, 8, lanes).sum(axis=0)  # (8,128) partial
        else:
            part = l
        psum_ref[...] = psum_ref[...] + part

    if needs_mask:
        last = pl.num_programs(1) - 1

        @pl.when(i < last)          # interior blocks: no mask arithmetic
        def _():
            _accum(loss)

        @pl.when(i == last)         # boundary block: mask the padded tail
        def _():
            row = lax.broadcasted_iota(jnp.int32, (th, lanes), 0) + i * th
            lane = lax.broadcasted_iota(jnp.int32, (th, lanes), 1)
            idx = row * lanes + lane
            _accum(jnp.where(idx < hw_valid, loss, 0.0))
    else:
        _accum(loss)


def _focal_none_kernel(x_ref, t_ref, loss_ref, *, alpha, gamma):
    loss_ref[...] = _focal_elementwise(x_ref, t_ref, alpha, gamma).astype(
        loss_ref.dtype)


def softmax_focal_loss(inputs, target, alpha=0.25, gamma=2, reduction="mean"):
    """inputs: (N, 2, H, W); target: (N, H, W) in [0, 1]."""
    N, C, H, W = inputs.shape
    assert C == 2, "SoftmaxFocalLoss expects 2 channels (binary case)"
    HW = H * W
    M = N * HW

    gen = _tpu_generation()
    max_th = 2048 if gen >= 7 else 1024

    # Natural NCHW layout. If H*W is a multiple of 128 the reshapes below are
    # free (contiguous); otherwise only the flattened spatial axis is padded
    # (the smallest possible copy — no transpose ever).
    # TODO(synk): replace the pad fallback with a manual strided DMA
    # (memory_space=pl.ANY) so odd H*W also runs copy-free.
    HWp = _round_up(HW, _LANES)
    x3 = inputs.reshape(N, 2, HW)
    t2 = target.reshape(N, HW)
    if HWp != HW:
        x3 = jnp.pad(x3, ((0, 0), (0, 0), (0, HWp - HW)))
        t2 = jnp.pad(t2, ((0, 0), (0, HWp - HW)))
    rows = HWp // _LANES
    x4 = x3.reshape(N, 2, rows, _LANES)
    t3 = t2.reshape(N, rows, _LANES)

    th = rows if rows <= max_th else max_th
    steps = pl.cdiv(rows, th)
    needs_mask = (HWp != HW) or (steps * th != rows)

    x_spec = pl.BlockSpec((None, 2, th, _LANES), lambda n, i: (n, 0, i, 0))
    t_spec = pl.BlockSpec((None, th, _LANES), lambda n, i: (n, i, 0))

    # Batch axis: truly core-parallel on v7x (2 TensorCores); plain 'parallel'
    # elsewhere (single TC, zero cost).  NB: v7x with N == 1 uses one TC.
    lead_sem = pltpu.PARALLEL
    if gen >= 7 and hasattr(pltpu, "CORE_PARALLEL"):
        lead_sem = pltpu.CORE_PARALLEL

    if reduction in ("mean", "sum"):
        acc_rows = 8 if th % 8 == 0 else th
        kernel = functools.partial(
            _focal_sum_kernel, alpha=float(alpha), gamma=gamma,
            hw_valid=HW, needs_mask=needs_mask)
        psum = pl.pallas_call(
            kernel,
            out_shape=jax.ShapeDtypeStruct((N, acc_rows, _LANES), jnp.float32),
            grid_spec=pltpu.PrefetchScalarGridSpec(
                num_scalar_prefetch=0,
                grid=(N, steps),
                in_specs=[x_spec, t_spec],
                out_specs=pl.BlockSpec((None, acc_rows, _LANES),
                                       lambda n, i: (n, 0, 0)),
            ),
            compiler_params=pltpu.CompilerParams(
                dimension_semantics=(lead_sem, pltpu.ARBITRARY)),
        )(x4, t3)
        total = jnp.sum(psum)
        if reduction == "mean":
            return total / jnp.float32(M)
        return total

    # reduction == 'none': per-element loss, lane-dense (th, 128) stores that
    # reshape for free back to (N, H, W) on the fast path.
    out_dtype = (inputs.dtype if jnp.issubdtype(inputs.dtype, jnp.floating)
                 else jnp.float32)
    kernel = functools.partial(
        _focal_none_kernel, alpha=float(alpha), gamma=gamma)
    loss = pl.pallas_call(
        kernel,
        out_shape=jax.ShapeDtypeStruct((N, rows, _LANES), out_dtype),
        grid_spec=pltpu.PrefetchScalarGridSpec(
            num_scalar_prefetch=0,
            grid=(N, steps),
            in_specs=[x_spec, t_spec],
            out_specs=pl.BlockSpec((None, th, _LANES), lambda n, i: (n, i, 0)),
        ),
        compiler_params=pltpu.CompilerParams(
            dimension_semantics=(lead_sem, pltpu.PARALLEL)),
    )(x4, t3)
    if HWp == HW:
        return loss.reshape(N, H, W)                    # free reshape
    return loss.reshape(N, HWp)[:, :HW].reshape(N, H, W)


def _reference(inputs, target, alpha=0.25, gamma=2, reduction="mean"):
    prob = jax.nn.softmax(inputs, axis=1)
    one_hot = jnp.stack([1.0 - target, target], axis=1)
    pt = (prob * one_hot).sum(axis=1)
    ce = -jnp.log(pt)
    alpha_t = (alpha * one_hot).sum(axis=1)
    loss = alpha_t * jnp.power(1.0 - pt, gamma) * ce
    if reduction == "mean":
        return loss.mean()
    elif reduction == "sum":
        return loss.sum()
    return loss


if __name__ == "__main__":
    key = jax.random.PRNGKey(0)
    k1, k2 = jax.random.split(key)
    N, C, H, W = 2, 2, 16, 16
    inputs = jax.random.normal(k1, (N, C, H, W), jnp.float32)
    target = jax.random.bernoulli(k2, 0.5, (N, H, W)).astype(jnp.float32)

    out = softmax_focal_loss(inputs, target, alpha=0.25, gamma=2,
                             reduction="mean")
    out = jax.block_until_ready(out)
    ref = _reference(inputs, target, alpha=0.25, gamma=2, reduction="mean")
    assert jnp.allclose(out, ref, rtol=1e-5, atol=1e-6), (out, ref)

    out_sum = softmax_focal_loss(inputs, target, alpha=0.25, gamma=2,
                                 reduction="sum")
    out_sum = jax.block_until_ready(out_sum)
    ref_sum = _reference(inputs, target, alpha=0.25, gamma=2, reduction="sum")
    assert jnp.allclose(out_sum, ref_sum, rtol=1e-5, atol=1e-5), (out_sum, ref_sum)

    out_none = softmax_focal_loss(inputs, target, alpha=0.25, gamma=2,
                                  reduction="none")
    out_none = jax.block_until_ready(out_none)
    ref_none = _reference(inputs, target, alpha=0.25, gamma=2,
                          reduction="none")
    assert jnp.allclose(out_none, ref_none, rtol=1e-5, atol=1e-6)

    print("KERNEL_OK")
</pallas_src>

<mosaic_0001>
module attributes {stable_mosaic.version = 11 : i64} {
  func.func @_focal_sum_kernel(%arg0: i32, %arg1: i32, %arg2: memref<1x2x2x128xf32, #tpu.memory_space<vmem>>, %arg3: memref<1x2x128xf32, #tpu.memory_space<vmem>>, %arg4: memref<1x2x128xf32, #tpu.memory_space<vmem>>) attributes {dimension_semantics = [#tpu.dimension_semantics<parallel>, #tpu.dimension_semantics<arbitrary>], iteration_bounds = array<i64: 2, 1>, scalar_prefetch = 0 : i64, scratch_operands = 0 : i64, tpu.core_type = #tpu.core_type<tc>, window_params = [{transform_indices = @transform_0, window_bounds = array<i64: 1, 2, 2, 128>}, {transform_indices = @transform_1, window_bounds = array<i64: 1, 2, 128>}, {transform_indices = @transform_2, window_bounds = array<i64: 1, 2, 128>}]} {
    %c0_i32 = arith.constant 0 : i32
    %0 = arith.cmpi eq, %arg1, %c0_i32 : i32
    %1 = arith.extui %0 : i1 to i32
    %c0_i32_0 = arith.constant 0 : i32
    %2 = arith.cmpi ne, %1, %c0_i32_0 : i32
    scf.if %2 {
      %cst_23 = arith.constant 0.000000e+00 : f32
      %43 = vector.broadcast %cst_23 : f32 to vector<2x128xf32>
      %c0_24 = arith.constant 0 : index
      %c0_25 = arith.constant 0 : index
      %c0_26 = arith.constant 0 : index
      %44 = vector.load %arg4[%c0_24, %c0_25, %c0_26] : memref<1x2x128xf32, #tpu.memory_space<vmem>>, vector<1x2x128xf32>
      %45 = vector.shape_cast %44 : vector<1x2x128xf32> to vector<2x128xf32>
      %46 = vector.shape_cast %43 : vector<2x128xf32> to vector<1x2x128xf32>
      tpu.vector_store %arg4[%c0_24, %c0_25, %c0_26], %46 {strides = array<i32>} : memref<1x2x128xf32, #tpu.memory_space<vmem>>, vector<1x2x128xf32>,
    } else {
    }
    %c0 = arith.constant 0 : index
    %c0_1 = arith.constant 0 : index
    %c0_2 = arith.constant 0 : index
    %c0_3 = arith.constant 0 : index
    %3 = vector.load %arg2[%c0, %c0_1, %c0_2, %c0_3] : memref<1x2x2x128xf32, #tpu.memory_space<vmem>>, vector<1x1x2x128xf32>
    %4 = vector.shape_cast %3 : vector<1x1x2x128xf32> to vector<2x128xf32>
    %c0_4 = arith.constant 0 : index
    %c1 = arith.constant 1 : index
    %c0_5 = arith.constant 0 : index
    %c0_6 = arith.constant 0 : index
    %5 = vector.load %arg2[%c0_4, %c1, %c0_5, %c0_6] : memref<1x2x2x128xf32, #tpu.memory_space<vmem>>, vector<1x1x2x128xf32>
    %6 = vector.shape_cast %5 : vector<1x1x2x128xf32> to vector<2x128xf32>
    %c0_7 = arith.constant 0 : index
    %c0_8 = arith.constant 0 : index
    %c0_9 = arith.constant 0 : index
    %7 = vector.load %arg3[%c0_7, %c0_8, %c0_9] : memref<1x2x128xf32, #tpu.memory_space<vmem>>, vector<1x2x128xf32>
    %8 = vector.shape_cast %7 : vector<1x2x128xf32> to vector<2x128xf32>
    %9 = arith.subf %6, %4 : vector<2x128xf32>
    %10 = math.absf %9 : vector<2x128xf32>
    %cst = arith.constant 0.000000e+00 : f32
    %11 = vector.broadcast %cst : f32 to vector<2x128xf32>
    %12 = arith.subf %11, %10 : vector<2x128xf32>
    %13 = math.exp %12 : vector<2x128xf32>
    %cst_10 = arith.constant 1.000000e+00 : f32
    %14 = vector.broadcast %cst_10 : f32 to vector<2x128xf32>
    %15 = arith.addf %14, %13 : vector<2x128xf32>
    %cst_11 = arith.constant 1.000000e+00 : f32
    %16 = vector.broadcast %cst_11 : f32 to vector<2x128xf32>
    %17 = arith.divf %16, %15 : vector<2x128xf32>
    %18 = arith.mulf %13, %17 : vector<2x128xf32>
    %cst_12 = arith.constant 0.000000e+00 : f32
    %19 = vector.broadcast %cst_12 : f32 to vector<2x128xf32>
    %20 = arith.cmpf oge, %9, %19 : vector<2x128xf32>
    %21 = arith.select %20, %17, %18 : vector<2x128xi1>, vector<2x128xf32>
    %22 = arith.select %20, %18, %17 : vector<2x128xi1>, vector<2x128xf32>
    %cst_13 = arith.constant 1.000000e+00 : f32
    %23 = vector.broadcast %cst_13 : f32 to vector<2x128xf32>
    %24 = arith.subf %23, %8 : vector<2x128xf32>
    %25 = arith.mulf %22, %24 : vector<2x128xf32>
    %26 = arith.mulf %21, %8 : vector<2x128xf32>
    %27 = arith.addf %25, %26 : vector<2x128xf32>
    %28 = math.log %27 : vector<2x128xf32>
    %cst_14 = arith.constant 0.000000e+00 : f32
    %29 = vector.broadcast %cst_14 : f32 to vector<2x128xf32>
    %30 = arith.subf %29, %28 : vector<2x128xf32>
    %cst_15 = arith.constant 1.000000e+00 : f32
    %31 = vector.broadcast %cst_15 : f32 to vector<2x128xf32>
    %32 = arith.subf %31, %27 : vector<2x128xf32>
    %33 = arith.mulf %32, %32 : vector<2x128xf32>
    %cst_16 = arith.constant 2.500000e-01 : f32
    %34 = vector.broadcast %cst_16 : f32 to vector<2x128xf32>
    %35 = arith.mulf %34, %33 : vector<2x128xf32>
    %36 = arith.mulf %35, %30 : vector<2x128xf32>
    %c0_17 = arith.constant 0 : index
    %c0_18 = arith.constant 0 : index
    %c0_19 = arith.constant 0 : index
    %37 = vector.load %arg4[%c0_17, %c0_18, %c0_19] : memref<1x2x128xf32, #tpu.memory_space<vmem>>, vector<1x2x128xf32>
    %38 = vector.shape_cast %37 : vector<1x2x128xf32> to vector<2x128xf32>
    %39 = arith.addf %38, %36 : vector<2x128xf32>
    %c0_20 = arith.constant 0 : index
    %c0_21 = arith.constant 0 : index
    %c0_22 = arith.constant 0 : index
    %40 = vector.load %arg4[%c0_20, %c0_21, %c0_22] : memref<1x2x128xf32, #tpu.memory_space<vmem>>, vector<1x2x128xf32>
    %41 = vector.shape_cast %40 : vector<1x2x128xf32> to vector<2x128xf32>
    %42 = vector.shape_cast %39 : vector<2x128xf32> to vector<1x2x128xf32>
    tpu.vector_store %arg4[%c0_20, %c0_21, %c0_22], %42 {strides = array<i32>} : memref<1x2x128xf32, #tpu.memory_space<vmem>>, vector<1x2x128xf32>,
    return
  }
  func.func @transform_0(%arg0: i32, %arg1: i32) -> (i32, i32, i32, i32) {
    %c0_i32 = arith.constant 0 : i32
    %c0_i32_0 = arith.constant 0 : i32
    %c0_i32_1 = arith.constant 0 : i32
    return %arg0, %c0_i32, %arg1, %c0_i32_0 : i32, i32, i32, i32
  }
  func.func @transform_1(%arg0: i32, %arg1: i32) -> (i32, i32, i32) {
    %c0_i32 = arith.constant 0 : i32
    %c0_i32_0 = arith.constant 0 : i32
    return %arg0, %arg1, %c0_i32 : i32, i32, i32
  }
  func.func @transform_2(%arg0: i32, %arg1: i32) -> (i32, i32, i32) {
    %c0_i32 = arith.constant 0 : i32
    %c0_i32_0 = arith.constant 0 : i32
    %c0_i32_1 = arith.constant 0 : i32
    return %arg0, %c0_i32, %c0_i32_0 : i32, i32, i32
  }
}

</mosaic_0001>

<bundles_post_ra>
// kernel: tpu_custom_call.1
= control target key start
LH: loop header
LB: loop body
LE: loop exit
PB: predicated region body
PF: predicated region fallthrough
CT: control target
= control target key end

     0   :  { %7 = vsyncpa [#allocation3], 0  ;;  %s855_s0 = inlined_call_operand.hbm [shape: f32[2,2,2,128], index: 0, kind: input, shape index: {}]   ;;  %s856_s1 = inlined_call_operand.hbm [shape: f32[2,2,128], index: 1, kind: input, shape index: {}]   ;;  %s857_s2 = inlined_call_operand.hbm [shape: f32[2,2,128], index: 2, kind: output, shape index: {}]  }
   0x1   :  { %9 = vsyncpa [#allocation3 + $0x1], 0 }
   0x2   :  { %10 = vsyncpa [#allocation6], 0 }
   0x3   :  { %12 = vsyncpa [#allocation6 + $0x1], 0 }
   0x4   :  { %13 = vsyncpa [#allocation4], 0 }
   0x5   :  { %15 = vsyncpa [#allocation4 + $0x1], 0  ;;  %s634_s9 = smov 0   ;;  %s636_s10 = smov 0  }
   0x6   :  { %s638_s11 = smov 0   ;;  %s640_s12 = smov 0  }
   0x7   :  { %s642_s13 = smov 0   ;;  %s644_s14 = smov 0  }
   0x8 LB: > { %s370_s15 = sadd.s32 4294967295, %s611_s14   ;;  %s371_s16 = sadd.s32 4294967294, %s611_s14   ;;  %s611_s14 = sphi %s644_s14, %s21_s14   ;;  %s607_s13 = sphi %s642_s13, %s876_s13   ;;  %s603_s12 = sphi %s640_s12, %s875_s12   ;;  %s599_s11 = sphi %s638_s11, %s874_s11   ;;  %s595_s10 = sphi %s636_s10, %s873_s10   ;;  %s591_s9 = sphi %s634_s9, %s872_s9  }
   0x9   : > { %s33_s17 = sadd.s32 1, %s607_s13  ;;  %s42_s18 = sadd.s32 1, %s599_s11 }
   0xa   : > { %p35_p0 = scmp.ge.s32.totalorder %s33_s17, 2  ;;  %p49_p1 = scmp.ne.s32.totalorder %s599_s11, %s595_s10 }
   0xb   : > { %p50_p2 = scmp.eq.s32.totalorder %s611_s14, 0  ;;  %p55_p3 = scmp.ne.s32.totalorder %s595_s10, %s591_s9 }
   0xc   : > { %s878_s17 = smov (%p35_p0, %s33_s17), 0  ;;  %p56_p5 = scmp.eq.s32.totalorder %s370_s15, 0 }
   0xd   : > { %p675_p4 = por %p50_p2, %p49_p1  ;;  %s37_s20 = ssub.s32 %s607_s13, %s878_s17 }
   0xe   : > { %p107_p6 = scmp.eq.s32.totalorder %s370_s15, 1  ;;  %p40_p7 = scmp.eq.s32.totalorder %s37_s20, 0 }
   0xf   : > { %p681_p8 = por %p56_p5, %p55_p3  ;;  %p113_p10 = scmp.eq.s32.totalorder %s371_s16, 1 }
  0x10   : > { %p685_p9 = por %p107_p6, %p49_p1  ;;  %p406_p13 = scmp.lt.s32.totalorder %s611_s14, 2 }
  0x11   : > { %s861_s21 = scalar_select %p681_p8, 1, 0 }
  0x12   : > { %s862_s22 = scalar_select %p685_p9, 1, 0 }
  0x13   : > { %s690_s23 = scalar_select %p40_p7, %s599_s11, %s42_s18  }
  0x14   : > { %p692_p11 = por %p113_p10, %p55_p3  ;;  %s699_s25 = sand.u32 1, %s599_s11  }
  0x15   : > { %s374_s26 = sshll.u32 %s699_s25, 2  ;;  %s388_s27 = sshll.u32 %s607_s13, 6 }
  0x16   : > { %s863_s24 = scalar_select %p692_p11, 1, 0 }
  0x17   : > { %s706_s30 = scalar_lea.hbm %s855_s0, %s388_s27  ;;  %s137_s3 = scalar_lea.vmem [#allocation2], %s374_s26 }
  0x18   : > { %s145_s4 = sshll.u32 %s137_s3, 4  ;;  %p712_p0 = pnand %p406_p13, %p675_p4  ;;  %s708_s4 = int_to_ptr.vmem [resolvable:$true] %s145_s4 }
  0x19   : > { %s134_s6 = scalar_lea.sflag [#allocation3], %s699_s25  ;;  %s465_s7 = scalar_lea.hbm %s706_s30, 64 }
  0x1a   : > { %p466_p2 = scmp.ne.s32.totalorder %s706_s30, %s465_s7  ;;  %p467_p3 = pneg %p712_p0 }
  0x1b   : > { %s470_s16 = scalar_lea.hbm %s855_s0, 128  ;;  %p471_p4 = scmp.lt.u32.totalorder %s706_s30, %s855_s0 }
  0x1c   : > { %p468_p5 = pnand %p467_p3, %p466_p2  ;;  %p472_p7 = scmp.lt.u32.totalorder %s470_s16, %s465_s7 }
  0x1d   : > { %p474_p13 = scmp.lt.u32.totalorder %s465_s7, %s706_s30 }
  0x1e   : > { %p469_p6 = pneg %p468_p5  ;;  %p473_p10 = por %p472_p7, %p471_p4 }
  0x20   : > { %p475_p12 = por %p474_p13, %p473_p10 }
  0x22   : > { %p476_p1 = pnand %p475_p12, %p469_p6 }
  0x24   : > { %479 = shalt.err (!%p476_p1)
}
  0x25   : > { %s480_s20 = scalar_lea.vmem %s708_s4, 64  ;;  %s613_s26 = smov [#allocation2]  }
  0x26   : > { %p481_p2 = scmp.ne.s32.totalorder %s708_s4, %s480_s20  ;;  %s485_s27 = sshll.u32 %s613_s26, 4  ;;  %s486_s27 = int_to_ptr.vmem [resolvable:$false] %s485_s27 }
  0x27   : > { %s487_s28 = scalar_lea.vmem %s486_s27, 128  ;;  %p488_p9 = scmp.lt.s32.totalorder %s708_s4, %s486_s27 }
  0x28   : > { %p483_p5 = pnand %p481_p2, %p467_p3  ;;  %p489_p4 = scmp.lt.s32.totalorder %s487_s28, %s480_s20 }
  0x2a   : > { %p484_p11 = pneg %p483_p5  ;;  %p490_p7 = por %p489_p4, %p488_p9 }
  0x2c   : > { %p491_p10 = pnand %p490_p7, %p484_p11 }
  0x2e   : > { %494 = shalt.err (!%p491_p10)
}
  0x2f   : > { %s614_s29 = smov 32   ;;  %s615_s3 = smov 2  }
  0x30   : > { %398 = dma.hbm_to_vmem [thread:$0]  (!%p712_p0), %s706_s30, 64, %s708_s4, %s134_s6, %s614_s29, %s614_s29, %s615_s3  }
  0x31   : > { %p172_p12 = scmp.lt.s32.totalorder %s611_s14, 3  ;;  %s377_s7 = sshll.u32 %s699_s25, 1 }
  0x32   : > { %s378_s8 = sshll.u32 %s607_s13, 5  ;;  %p865_p9 = scmp.ge.s32.totalorder %s611_s14, 1 }
  0x33   : > { %s757_s19 = scalar_lea.hbm %s856_s1, %s378_s8  ;;  %s159_s20 = scalar_lea.vmem [#allocation5], %s377_s7 }
  0x34   : > { %p750_p11 = pnand %p865_p9, %p172_p12  ;;  %s167_s26 = sshll.u32 %s159_s20, 4  ;;  %s168_s26 = int_to_ptr.vmem [resolvable:$true] %s167_s26 }
  0x35   : > { %s156_s30 = scalar_lea.sflag [#allocation6], %s699_s25  ;;  %s495_s4 = scalar_lea.hbm %s757_s19, 32 }
  0x36   : > { %s866_s15 = scalar_select %p750_p11, 1, 0 }
  0x37   : > { %p496_p1 = scmp.ne.s32.totalorder %s757_s19, %s495_s4  ;;  %s500_s28 = scalar_lea.hbm %s856_s1, 64 }
  0x38   : > { %p501_p2 = scmp.lt.u32.totalorder %s757_s19, %s856_s1  ;;  %p502_p5 = scmp.lt.u32.totalorder %s500_s28, %s495_s4 }
  0x39   : > { %p498_p6 = pnand %p496_p1, %p467_p3  ;;  %p504_p7 = scmp.lt.u32.totalorder %s495_s4, %s757_s19 }
  0x3a   : > { %p503_p4 = por %p502_p5, %p501_p2 }
  0x3b   : > { %p499_p13 = pneg %p498_p6 }
  0x3c   : > { %p505_p10 = por %p504_p7, %p503_p4 }
  0x3e   : > { %p506_p12 = pnand %p505_p10, %p499_p13 }
  0x40   : > { %509 = shalt.err (!%p506_p12)
}
  0x41   : > { %s510_s25 = scalar_lea.vmem %s168_s26, 32  ;;  %s616_s7 = smov [#allocation5]  }
  0x42   : > { %p511_p9 = scmp.ne.s32.totalorder %s168_s26, %s510_s25  ;;  %s515_s8 = sshll.u32 %s616_s7, 4  ;;  %s516_s8 = int_to_ptr.vmem [resolvable:$false] %s515_s8 }
  0x43   : > { %s517_s16 = scalar_lea.vmem %s516_s8, 64  ;;  %p518_p8 = scmp.lt.s32.totalorder %s168_s26, %s516_s8 }
  0x44   : > { %p513_p1 = pnand %p511_p9, %p467_p3  ;;  %p519_p11 = scmp.lt.s32.totalorder %s517_s16, %s510_s25 }
  0x46   : > { %p514_p6 = pneg %p513_p1  ;;  %p520_p2 = por %p519_p11, %p518_p8 }
  0x48   : > { %p521_p5 = pnand %p520_p2, %p514_p6 }
  0x4a   : > { %524 = shalt.err (!%p521_p5)
}
  0x4b   : > { %401 = dma.hbm_to_vmem [thread:$0]  (!%p712_p0), %s757_s19, 32, %s168_s26, %s156_s30  }
  0x4c   : > { %p867_p13 = scmp.ne.s32.totalorder %s866_s15, 0 }
  0x4d   : > { %s782_s18 = sand.u32 (!%p867_p13), 1, %s595_s10   ;;  %p868_p3 = scmp.ne.s32.totalorder (!%p867_p13), %s861_s21, 0 }
  0x4e   : > { %176 = sbr.rel (%p867_p13) target bundleno = 163 (0xa3), region = 28  ;;  %s380_s20 = sshll.u32 (!%p867_p13), %s782_s18, 2 }
  0x4f   : > { %s179_s4 = scalar_lea.sflag (!%p867_p13), [#allocation3], %s782_s18  ;;  %s182_s6 = scalar_lea.vmem (!%p867_p13), [#allocation2], %s380_s20 }
  0x55   : > { %578 = dma.done.wait (%p868_p3), %s179_s4, 64  }
  0x56   : > { %580 = vsyncadd (%p868_p3), %s179_s4, 4294967232  ;;  %s381_s5 = sshll.u32 %s782_s18, 1  ;;  %s188_s15 = scalar_lea.sflag [#allocation6], %s782_s18 }
  0x57   : > { %s191_s19 = scalar_lea.vmem [#allocation5], %s381_s5 }
  0x58   : > { %582 = dma.done.wait (%p868_p3), %s188_s15, 32  }
  0x59   : > { %584 = vsyncadd (%p868_p3), %s188_s15, 4294967264  ;;  %s796_s26 = scalar_lea.vmem [#allocation7], %s381_s5  ;;  %v617_v0 = vmov 0.0   ;;  %v222_v1 = vld [vmem:[%s182_s6] sm:$0x3]  ;;  %s385_s21 = sshll.u32 %s603_s12, 5 }
  0x5a   : > { %221 = vst [vmem:[%s796_s26] sm:$0x3] %v617_v0  ;;  %v383_v2 = vld [vmem:[%s182_s6 + $0x2] sm:$0x3]  ;;  %v225_v9 = vld [vmem:[%s191_s19] sm:$0x3]  ;;  %s266_s30 = sshll.u32 %s796_s26, 4  ;;  %s805_s29 = scalar_lea.hbm %s857_s2, %s385_s21  ;;  %s807_s30 = int_to_ptr.vmem [resolvable:$true] %s266_s30 }
  0x5b   : > { %v226_v3 = vsub.f32 %v383_v2, %v222_v1  ;;  %v238_v11 = vsub.f32 1.0, %v225_v9  ;;  %s253_s3 = scalar_lea.sflag [#allocation4], %s782_s18  ;;  %s525_s25 = scalar_lea.vmem %s807_s30, 32 }
  0x5c   : > { %p526_p8 = scmp.ne.s32.totalorder %s807_s30, %s525_s25  ;;  %p869_p0 = scmp.ne.s32.totalorder %s862_s22, 0 }
  0x5d   : > { %v227_v4 = vand.u32 2147483647, %v226_v3  ;;  %vm235_vm0 = vcmp.ge.f32.partialorder %v226_v3, 0.0  ;;  %s618_s12 = smov [#allocation7]  }
  0x5e   : > { %p527_p11 = pnand %p526_p8, %p869_p0  ;;  %s529_s7 = sshll.u32 %s618_s12, 4  ;;  %s530_s7 = int_to_ptr.vmem [resolvable:$false] %s529_s7 }
  0x5f   : > { %v228_v5 = vsub.f32 0.0, %v227_v4  ;;  %s531_s8 = scalar_lea.vmem %s530_s7, 64  ;;  %p532_p7 = scmp.lt.s32.totalorder %s807_s30, %s530_s7 }
  0x60   : > { %p528_p4 = pneg %p527_p11  ;;  %p533_p10 = scmp.lt.s32.totalorder %s531_s8, %s525_s25 }
  0x61   : > { %v229_v6 = vmul.f32 1.442695, %v228_v5  ;;  %v249_v24 = vld [vmem:[%s796_s26] sm:$0x3] }
  0x62   : > { %p534_p12 = por %p533_p10, %p532_p7 }
  0x63   : > { %459 = vpow2.f32 %v229_v6 }
  0x64   : > { %p535_p9 = pnand %p534_p12, %p528_p4 }
  0x6d   : > { %v460_v7 = vpop.eup %459 }
  0x6e   : > { %v231_v8 = vadd.f32 1.0, %v460_v7 }
  0x70   : > { %461 = vrcp.f32 %v231_v8 }
  0x7a   : > { %v462_v10 = vpop.eup %461 }
  0x7b   : > { %v234_v12 = vmul.f32 %v462_v10, %v460_v7 }
  0x7d   : > { %v236_v13 = vsel %vm235_vm0, %v462_v10, %v234_v12  ;;  %v237_v14 = vsel %vm235_vm0, %v234_v12, %v462_v10 }
  0x7e   : > { %v239_v15 = vmul.f32 %v238_v11, %v237_v14  ;;  %v240_v16 = vmul.f32 %v236_v13, %v225_v9 }
  0x80   : > { %v241_v17 = vadd.f32 %v240_v16, %v239_v15 }
  0x82   : > { %463 = vlog2.f32 %v241_v17  ;;  %v245_v18 = vsub.f32 1.0, %v241_v17 }
  0x84   : > { %v246_v19 = vmul.f32 %v245_v18, %v245_v18 }
  0x86   : > { %v247_v22 = vmul.f32 0.25, %v246_v19 }
  0x8c   : > { %v464_v20 = vpop.eup %463 }
  0x8d   : > { %v243_v21 = vmul.f32 0.6931472, %v464_v20 }
  0x8f   : > { %v244_v23 = vsub.f32 0.0, %v243_v21 }
  0x91   : > { %v248_v25 = vmul.f32 %v247_v22, %v244_v23 }
  0x93   : > { %v250_v26 = vadd.f32 %v249_v24, %v248_v25 }
  0x95   : > { %251 = vst [vmem:[%s796_s26] sm:$0x3] %v250_v26 }
  0x96   : > { %538 = shalt.err (!%p535_p9)
}
  0x97   : > { %s539_s16 = scalar_lea.hbm %s805_s29, 32  ;;  %s543_s4 = scalar_lea.hbm %s857_s2, 64 }
  0x98   : > { %p540_p1 = scmp.ne.s32.totalorder %s805_s29, %s539_s16  ;;  %p544_p5 = scmp.lt.u32.totalorder %s805_s29, %s857_s2 }
  0x99   : > { %p545_p13 = scmp.lt.u32.totalorder %s543_s4, %s539_s16  ;;  %p547_p8 = scmp.lt.u32.totalorder %s539_s16, %s805_s29 }
  0x9a   : > { %p541_p6 = pnand %p540_p1, %p869_p0 }
  0x9b   : > { %p546_p3 = por %p545_p13, %p544_p5 }
  0x9c   : > { %p542_p2 = pneg %p541_p6 }
  0x9d   : > { %p548_p11 = por %p547_p8, %p546_p3 }
  0x9f   : > { %p549_p4 = pnand %p548_p11, %p542_p2 }
  0xa1   : > { %552 = shalt.err (!%p549_p4)
}
  0xa2   : > { %393 = dma.vmem_to_hbm [thread:$0]  (%p869_p0), %s807_s30, 32, %s805_s29, %s253_s3  }
  0xa3 PF: > { %s278_s15 = sand.u32 1, %s591_s9   ;;  %p870_p7 = scmp.ne.s32.totalorder %s863_s24, 0 }
  0xa4   : > { %p871_p10 = scmp.ge.s32.totalorder %s611_s14, 2  ;;  %s279_s19 = scalar_lea.sflag [#allocation4], %s278_s15 }
  0xa6   : > { %p403_p12 = pnand %p871_p10, %p870_p7 }
  0xa8   : > { %586 = dma.done.wait (!%p403_p12), %s279_s19, 32  }
  0xa9   : > { %588 = vsyncadd (!%p403_p12), %s279_s19, 4294967264  ;;  %s21_s14 = sadd.s32 1, %s611_s14   ;;  %s872_s9 = smov %s595_s10 }
  0xaa   : > { %p18_p9 = scmp.ge.s32.totalorder %s21_s14, 4   ;;  %s873_s10 = smov %s599_s11 }
  0xab   : > { %s874_s11 = smov %s690_s23  ;;  %s875_s12 = smov %s607_s13 }
  0xac   : > { %s876_s13 = smov %s878_s17  ;;  %20 = sbr.rel (!%p18_p9) target bundleno = 8 (0x8), region = 91 }
  0xb3   :  { %284 = vsyncpa [#allocation3], 1 }
  0xb4   :  { %286 = vsyncpa [#allocation3 + $0x1], 1 }
  0xb5   :  { %287 = vsyncpa [#allocation6], 1 }
  0xb6   :  { %289 = vsyncpa [#allocation6 + $0x1], 1 }
  0xb7   :  { %290 = vsyncpa [#allocation4], 1 }
  0xb8   :  { %292 = vsyncpa [#allocation4 + $0x1], 1 }

</bundles_post_ra>
